<compile_context>
chip_gen: v5e
topology: v5e:2x2
jax: 0.10.0
libtpu: 0.0.40
codegen_flags: <defaults>
</compile_context>

<pallas_src>
import jax
import jax.numpy as jnp
from jax.experimental import pallas as pl
from jax.experimental.pallas import tpu as pltpu

N_LAYERS = 3  # number of invertible modules in the list


def _pick_tile(dim, max_tile, align):
    """Largest tile <= max_tile that is a multiple of `align` and divides `dim`.

    Falls back to the full dimension (always legal for BlockSpec) if no such
    divisor exists or the dim is already small.
    """
    if dim <= max_tile:
        return dim
    t = (max_tile // align) * align
    while t >= align:
        if dim % t == 0:
            return t
        t -= align
    return dim


def _affine_kernel(x_ref, s_ref, b_ref, o_ref):
    """o = x * scale + bias, with per-row (== per-channel) scale/bias.

    x_ref : (tr, tc)  streamed tile of the flattened (B*C, H*W) activation
    s_ref : (tr, 1)   effective per-row scale (f32)
    b_ref : (tr, 1)   effective per-row bias  (f32)
    """
    x = x_ref[...].astype(jnp.float32)
    o_ref[...] = (x * s_ref[...] + b_ref[...]).astype(o_ref.dtype)


def invertible_module_list_forward(x, logv, log_scales, biases):
    """Pallas implementation of InvertibleModuleList.forward(x, logv)."""
    B, C, H, W = x.shape
    HW = H * W
    L = log_scales.shape[0]

    ls = log_scales.astype(jnp.float32)  # (L, C)
    bs = biases.astype(jnp.float32)      # (L, C)

    # ---- Fold the L sequential affines into one effective (scale, bias). ----
    # x_{l+1} = x_l * exp(s_l) + b_l  ==>
    #   eff_scale = prod_l exp(s_l),  eff_bias = fold(b <- b*exp(s_l) + b_l).
    eff_scale = jnp.exp(jnp.sum(ls, axis=0))            # (C,)
    eff_bias = jnp.zeros((C,), jnp.float32)
    for l in range(L):                                   # L is small & static
        eff_bias = eff_bias * jnp.exp(ls[l]) + bs[l]

    # ---- x-independent log-volume update: tiny XLA op, not in the kernel. ----
    logv_out = (logv.astype(jnp.float32)
                + jnp.float32(HW) * jnp.sum(ls)).astype(logv.dtype)

    # ---- Lane-dense 2-D retiling of x: (B, C, H, W) -> (B*C, HW). ----
    R = B * C
    x2 = x.reshape(R, HW)                                # keep HBM dtype as-is
    scale_rows = jnp.tile(eff_scale, B).reshape(R, 1)    # per-row params (f32)
    bias_rows = jnp.tile(eff_bias, B).reshape(R, 1)

    tr = _pick_tile(R, 512, 8)      # sublane-aligned row tile
    tc = _pick_tile(HW, 2048, 128)  # lane-aligned column tile (<=2048)
    grid = (R // tr, HW // tc)

    x_out = pl.pallas_call(
        _affine_kernel,
        out_shape=jax.ShapeDtypeStruct((R, HW), x.dtype),
        grid_spec=pltpu.PrefetchScalarGridSpec(
            num_scalar_prefetch=0,
            grid=grid,
            in_specs=[
                pl.BlockSpec((tr, tc), lambda i, j: (i, j)),  # x tile
                pl.BlockSpec((tr, 1), lambda i, j: (i, 0)),   # eff scale rows
                pl.BlockSpec((tr, 1), lambda i, j: (i, 0)),   # eff bias rows
            ],
            out_specs=pl.BlockSpec((tr, tc), lambda i, j: (i, j)),
        ),
        compiler_params=pltpu.CompilerParams(
            dimension_semantics=("parallel", "parallel"),
            vmem_limit_bytes=48 * 1024 * 1024,
        ),
    )(x2, scale_rows, bias_rows)

    return x_out.reshape(B, C, H, W), logv_out


def _reference_forward(x, logv, log_scales, biases):
    """Pure-JAX reference of the same sequential composition."""
    B, C, H, W = x.shape
    for l in range(log_scales.shape[0]):
        s = jnp.exp(log_scales[l])[None, :, None, None]
        b = biases[l][None, :, None, None]
        x = x * s + b
        logv = logv + (H * W) * jnp.sum(log_scales[l])
    return x, logv


if __name__ == "__main__":
    key = jax.random.PRNGKey(0)
    kx, kv, ks, kb = jax.random.split(key, 4)

    B, C, H, W = 2, 4, 16, 16
    x = jax.random.normal(kx, (B, C, H, W), dtype=jnp.float32)
    logv = jax.random.normal(kv, (B,), dtype=jnp.float32)

    # Deterministic per-layer parameters (ActNorm-style invertible modules).
    log_scales = 0.1 * jax.random.normal(ks, (N_LAYERS, C), dtype=jnp.float32)
    biases = jax.random.normal(kb, (N_LAYERS, C), dtype=jnp.float32)

    x_out, logv_out = invertible_module_list_forward(x, logv, log_scales, biases)
    x_out = jax.block_until_ready(x_out)
    logv_out = jax.block_until_ready(logv_out)

    x_ref, logv_ref = _reference_forward(x, logv, log_scales, biases)

    assert x_out.shape == (B, C, H, W)
    assert logv_out.shape == (B,)
    assert jnp.allclose(x_out, x_ref, atol=1e-5, rtol=1e-5)
    assert jnp.allclose(logv_out, logv_ref, atol=1e-5, rtol=1e-5)

    print("KERNEL_OK")
</pallas_src>

<mosaic_0001>
module attributes {stable_mosaic.version = 11 : i64} {
  func.func @_affine_kernel(%arg0: i32, %arg1: i32, %arg2: memref<8x256xf32, #tpu.memory_space<vmem>>, %arg3: memref<8x1xf32, #tpu.memory_space<vmem>>, %arg4: memref<8x1xf32, #tpu.memory_space<vmem>>, %arg5: memref<8x256xf32, #tpu.memory_space<vmem>>) attributes {dimension_semantics = [#tpu.dimension_semantics<parallel>, #tpu.dimension_semantics<parallel>], iteration_bounds = array<i64: 1, 1>, scalar_prefetch = 0 : i64, scratch_operands = 0 : i64, tpu.core_type = #tpu.core_type<tc>, window_params = [{transform_indices = @transform_0, window_bounds = array<i64: 8, 256>}, {transform_indices = @transform_1, window_bounds = array<i64: 8, 1>}, {transform_indices = @transform_2, window_bounds = array<i64: 8, 1>}, {transform_indices = @transform_3, window_bounds = array<i64: 8, 256>}]} {
    %c0 = arith.constant 0 : index
    %c0_0 = arith.constant 0 : index
    %0 = vector.load %arg2[%c0, %c0_0] : memref<8x256xf32, #tpu.memory_space<vmem>>, vector<8x256xf32>
    %c0_1 = arith.constant 0 : index
    %c0_2 = arith.constant 0 : index
    %1 = vector.load %arg3[%c0_1, %c0_2] : memref<8x1xf32, #tpu.memory_space<vmem>>, vector<8x1xf32>
    %2 = vector.broadcast %1 : vector<8x1xf32> to vector<8x256xf32>
    %3 = arith.mulf %0, %2 : vector<8x256xf32>
    %c0_3 = arith.constant 0 : index
    %c0_4 = arith.constant 0 : index
    %4 = vector.load %arg4[%c0_3, %c0_4] : memref<8x1xf32, #tpu.memory_space<vmem>>, vector<8x1xf32>
    %5 = vector.broadcast %4 : vector<8x1xf32> to vector<8x256xf32>
    %6 = arith.addf %3, %5 : vector<8x256xf32>
    %c0_5 = arith.constant 0 : index
    %c0_6 = arith.constant 0 : index
    %7 = vector.load %arg5[%c0_5, %c0_6] : memref<8x256xf32, #tpu.memory_space<vmem>>, vector<8x256xf32>
    tpu.vector_store %arg5[%c0_5, %c0_6], %6 {strides = array<i32>} : memref<8x256xf32, #tpu.memory_space<vmem>>, vector<8x256xf32>,
    return
  }
  func.func @transform_0(%arg0: i32, %arg1: i32) -> (i32, i32) {
    %c0_i32 = arith.constant 0 : i32
    return %arg0, %arg1 : i32, i32
  }
  func.func @transform_1(%arg0: i32, %arg1: i32) -> (i32, i32) {
    %c0_i32 = arith.constant 0 : i32
    %c0_i32_0 = arith.constant 0 : i32
    return %arg0, %c0_i32 : i32, i32
  }
  func.func @transform_2(%arg0: i32, %arg1: i32) -> (i32, i32) {
    %c0_i32 = arith.constant 0 : i32
    %c0_i32_0 = arith.constant 0 : i32
    return %arg0, %c0_i32 : i32, i32
  }
  func.func @transform_3(%arg0: i32, %arg1: i32) -> (i32, i32) {
    %c0_i32 = arith.constant 0 : i32
    return %arg0, %arg1 : i32, i32
  }
}

</mosaic_0001>

<bundles_post_ra>
// kernel: tpu_custom_call.1
= control target key start
LH: loop header
LB: loop body
LE: loop exit
PB: predicated region body
PF: predicated region fallthrough
CT: control target
= control target key end

     0   :  { %s117_s0 = inlined_call_operand.vmem [shape: f32[8,256], index: 0, kind: input, shape index: {}]   ;;  %s118_s1 = inlined_call_operand.vmem [shape: f32[8,1], index: 1, kind: input, shape index: {}]   ;;  %s119_s2 = inlined_call_operand.vmem [shape: f32[8,1], index: 2, kind: input, shape index: {}]   ;;  %s120_s3 = inlined_call_operand.hbm [shape: f32[8,256], index: 3, kind: output, shape index: {}]  }
   0x1   :  { %v17_v0 = vld [vmem:[%s118_s1] sm:$0xff] }
   0x2   :  { %8 = vsyncpa [#allocation3], 0  ;;  %v80_v1 = vmov 0   ;;  %v25_v2 = vld [vmem:[%s119_s2] sm:$0xff]  ;;  %v16_v5 = vld [vmem:[%s117_s0 + $0x8] sm:$0xff]  ;;  %s81_s1 = smov [#allocation2]  }
   0x3   :  { %53 = vset.pattern.permute.xlu0 %v80_v1  ;;  %v15_v4 = vld [vmem:[%s117_s0] sm:$0xff]  ;;  %s40_s20 = sshll.u32 %s81_s1, 4  ;;  %s42_s23 = sshll.u32 %s120_s3, 4  ;;  %s41_s20 = int_to_ptr.vmem [resolvable:$true] %s40_s20  ;;  %s43_s23 = int_to_ptr.hbm [resolvable:$true] %s42_s23 }
   0x4   :  { %20 = vperm.xlu0 %53, %v17_v0  }
   0xc   :  { %28 = vperm.xlu0 %53, %v25_v2  }
  0x76   :  { %v21_v3 = vpop.permute.xlu0 %20 }
  0x77   :  { %v23_v6 = vmul.f32 %v21_v3, %v15_v4  ;;  %v24_v7 = vmul.f32 %v21_v3, %v16_v5 }
  0x7e   :  { %v29_v8 = vpop.permute.xlu0 %28 }
  0x7f   :  { %v31_v9 = vadd.f32 %v29_v8, %v23_v6  ;;  %v32_v10 = vadd.f32 %v29_v8, %v24_v7 }
  0x81   :  { %33 = vst [vmem:[#allocation2] sm:$0xff] %v31_v9 }
  0x82   :  { %34 = vst [vmem:[#allocation2 + $0x8] sm:$0xff] %v32_v10 }
  0x83   :  { %45 = dma.vmem_to_hbm [thread:$0]  %s41_s20, 256, %s43_s23, [#allocation3]  }
  0x84   :  { %78 = dma.done.wait [#allocation3], 256  }
  0x85   :  { %79 = vsyncadd [#allocation3], 4294967040 }
  0x86   :  { %50 = vsyncpa [#allocation3], 1 }

</bundles_post_ra>
